<compile_context>
chip_gen: v7x
topology: tpu7x:2x2x1
jax: 0.10.0
libtpu: 0.0.40
codegen_flags: <defaults>
</compile_context>

<pallas_src>
import jax
import jax.numpy as jnp
from jax.experimental import pallas as pl
from jax.experimental.pallas import tpu as pltpu


def _neumf_kernel(u_ref, it_ref, w1_ref, ub1_ref, w2_ref, b2_ref, o_ref):
    """One (batch b, packed-row tile t) step.

    Shapes (P = pack factor, E = embed, H = 2E, O = out_size, tt = row tile):
      u_ref:   (1, P*E)    bf16  user row tiled P times along lanes
      it_ref:  (tt, P*E)   bf16  packed item rows
      w1_ref:  (2*P*E, P*H) bf16  vstack(blockdiag(W1a), blockdiag(W1c))
      ub1_ref: (1, P*H)    f32   per-batch bias  tile(u @ W1b + b1, P)
      w2_ref:  (P*H, P*O)  bf16  blockdiag(W2)
      b2_ref:  (1, P*O)    f32   tile(b2, P)
      o_ref:   (tt, P*O)   f32
    """
    u = u_ref[...]                      # (1, P*E) bf16
    it = it_ref[...]                    # (tt, P*E) bf16

    # Single linear1 dot: lane-concat [u*i, i] (both halves 128-lane aligned
    # at P=4) against the pre-stacked weight; user term is in ub1.
    x = jnp.concatenate([u * it, it], axis=-1)            # (tt, 2*P*E) bf16
    h = jnp.dot(x, w1_ref[...], preferred_element_type=jnp.float32)
    h = h + ub1_ref[...]                                   # f32 bias broadcast
    h = jnp.maximum(h, 0.0)                                 # ReLU (VPU)

    z = jnp.dot(h.astype(jnp.bfloat16), w2_ref[...],
                preferred_element_type=jnp.float32)
    o_ref[...] = (z + b2_ref[...]).astype(o_ref.dtype)


def _round_up(x, m):
    return (x + m - 1) // m * m


def _default_pack(embed_size):
    """Pick the row-pack factor so the packed linear1 output (P*2E) fills the
    MXU native width: 256 on v6e/v7x, 128 on v5e/v5p/v4 and older."""
    native = 256
    try:
        kind = jax.devices()[0].device_kind.lower()
        if any(t in kind for t in ("v2", "v3", "v4", "v5")):
            native = 128
    except Exception:
        pass
    return max(1, native // max(1, 2 * embed_size))


def simple_neumf(user_embed, item_embed, params, *, max_tile=1024, pack=None):
    """
    user_embed: (B, E) f32, item_embed: (B, T, E) f32 -> (B, T, out_size) f32
    params: dict with w1 (3E, 2E), b1 (2E,), w2 (2E, out), b2 (out,)
    max_tile is in packed rows (each packed row = P logical item rows).
    """
    B, T, E = item_embed.shape
    assert user_embed.shape == (B, E)
    f32, bf16 = jnp.float32, jnp.bfloat16
    w1, b1, w2, b2 = params["w1"], params["b1"], params["w2"], params["b2"]
    out_size = w2.shape[1]
    H = 2 * E

    P = _default_pack(E) if pack is None else max(1, int(pack))

    # --- Fold the user branch of linear1 into a per-batch bias (tiny matmul,
    #     done once in f32 by XLA):  ub1 = u @ W1[E:2E] + b1.
    w1a = w1[:E].astype(f32)            # multiplies u * i
    w1b = w1[E:2 * E].astype(f32)       # multiplies u      (folded into ub1)
    w1c = w1[2 * E:].astype(f32)        # multiplies i
    ub1 = user_embed.astype(f32) @ w1b + b1.astype(f32)        # (B, H)

    # --- Block-diagonal packed weights (built once, outside the kernel).
    eyeP = jnp.eye(P, dtype=f32)
    w1a_p = jnp.kron(eyeP, w1a)                                # (P*E, P*H)
    w1c_p = jnp.kron(eyeP, w1c)                                # (P*E, P*H)
    w1_p = jnp.concatenate([w1a_p, w1c_p], axis=0).astype(bf16)  # (2*P*E, P*H)
    w2_p = jnp.kron(eyeP, w2.astype(f32)).astype(bf16)         # (P*H, P*O)
    b2_p = jnp.tile(b2.astype(f32).reshape(1, -1), (1, P))     # (1, P*O)
    ub1_p = jnp.tile(ub1, (1, P)).reshape(B, 1, P * H)         # (B,1,P*H) f32
    u_p = jnp.tile(user_embed.astype(bf16), (1, P)).reshape(B, 1, P * E)

    # --- Balanced tiling over packed rows; keep >= 2 grid steps when possible
    #     so v7x's two TensorCores both get work.
    rows = pl.cdiv(T, P)                     # packed rows holding real data
    n_tiles = max(1, pl.cdiv(rows, max_tile))
    if B * n_tiles < 2 and rows > 8:
        n_tiles = 2
    tt = _round_up(pl.cdiv(rows, n_tiles), 8)
    rows_p = n_tiles * tt
    Tp = rows_p * P

    it = item_embed.astype(bf16)
    if Tp != T:
        it = jnp.pad(it, ((0, 0), (0, Tp - T), (0, 0)))
    it_p = it.reshape(B, rows_p, P * E)      # contiguous row packing

    grid = (B, n_tiles)

    out_p = pl.pallas_call(
        _neumf_kernel,
        out_shape=jax.ShapeDtypeStruct((B, rows_p, P * out_size), f32),
        grid_spec=pltpu.PrefetchScalarGridSpec(
            num_scalar_prefetch=0,
            grid=grid,
            in_specs=[
                # Per-batch packed user row (broadcast on-chip).
                pl.BlockSpec((None, 1, P * E), lambda b, t: (b, 0, 0)),
                # Tile of packed item rows for this (batch, tile) step.
                pl.BlockSpec((None, tt, P * E), lambda b, t: (b, t, 0)),
                # Weights: constant block index -> DMA'd once, VMEM-resident.
                pl.BlockSpec((2 * P * E, P * H), lambda b, t: (0, 0)),
                # Per-batch folded bias ub1.
                pl.BlockSpec((None, 1, P * H), lambda b, t: (b, 0, 0)),
                pl.BlockSpec((P * H, P * out_size), lambda b, t: (0, 0)),
                pl.BlockSpec((1, P * out_size), lambda b, t: (0, 0)),
            ],
            out_specs=pl.BlockSpec((None, tt, P * out_size),
                                   lambda b, t: (b, t, 0)),
        ),
        compiler_params=pltpu.CompilerParams(
            # Both grid axes independent -> shardable across TensorCores.
            dimension_semantics=("parallel", "parallel"),
        ),
    )(u_p, it_p, w1_p, ub1_p, w2_p, b2_p)

    # Undo the row packing (contiguous reshape) and drop padding rows.
    out = out_p.reshape(B, Tp, out_size)
    if Tp != T:
        out = out[:, :T, :]
    return out


def init_params(key, embed_size, out_size):
    """Deterministic init matching nn.Linear shapes (weights kept as (in, out))."""
    k1, k2, k3, k4 = jax.random.split(key, 4)
    lim1 = 1.0 / jnp.sqrt(3.0 * embed_size)
    lim2 = 1.0 / jnp.sqrt(2.0 * embed_size)
    return {
        "w1": jax.random.uniform(k1, (3 * embed_size, 2 * embed_size),
                                 jnp.float32, -lim1, lim1),
        "b1": jax.random.uniform(k2, (2 * embed_size,), jnp.float32, -lim1, lim1),
        "w2": jax.random.uniform(k3, (2 * embed_size, out_size),
                                 jnp.float32, -lim2, lim2),
        "b2": jax.random.uniform(k4, (out_size,), jnp.float32, -lim2, lim2),
    }


def neumf_reference(user_embed, item_embed, params):
    """Pure-JAX f32 reference mirroring the PyTorch forward."""
    B, T, E = item_embed.shape
    u = jnp.broadcast_to(user_embed[:, None, :], (B, T, E))
    x = jnp.concatenate([u * item_embed, u, item_embed], axis=2)
    a = jnp.maximum(x @ params["w1"] + params["b1"], 0.0)
    return a @ params["w2"] + params["b2"]


if __name__ == "__main__":
    embed_size = 32
    out_size = 16
    B, T = 2, 8

    key = jax.random.PRNGKey(0)
    k_u, k_i, k_p = jax.random.split(key, 3)

    user_embed = jax.random.normal(k_u, (B, embed_size), jnp.float32)
    item_embed = jax.random.normal(k_i, (B, T, embed_size), jnp.float32)
    params = init_params(k_p, embed_size, out_size)

    fwd = jax.jit(simple_neumf)
    out = fwd(user_embed, item_embed, params)
    out = jax.block_until_ready(out)

    ref = neumf_reference(user_embed, item_embed, params)
    assert out.shape == (B, T, out_size)
    # bf16 MXU path vs. the f32 XLA reference: bf16 quantization of inputs,
    # weights, and the hidden activations dominates the error -> loose bound
    # that still catches any packing / layout / weight-split bug.
    assert jnp.allclose(out, ref, atol=2e-2, rtol=2e-2), "mismatch vs reference"

    print("KERNEL_OK")
</pallas_src>

<mosaic_0001>
module attributes {stable_mosaic.version = 11 : i64} {
  func.func @_neumf_kernel(%arg0: i32, %arg1: i32, %arg2: memref<1x1x128xbf16, #tpu.memory_space<vmem>>, %arg3: memref<1x8x128xbf16, #tpu.memory_space<vmem>>, %arg4: memref<256x256xbf16, #tpu.memory_space<vmem>>, %arg5: memref<1x1x256xf32, #tpu.memory_space<vmem>>, %arg6: memref<256x64xbf16, #tpu.memory_space<vmem>>, %arg7: memref<1x64xf32, #tpu.memory_space<vmem>>, %arg8: memref<1x8x64xf32, #tpu.memory_space<vmem>>) attributes {dimension_semantics = [#tpu.dimension_semantics<parallel>, #tpu.dimension_semantics<parallel>], iteration_bounds = array<i64: 2, 1>, scalar_prefetch = 0 : i64, scratch_operands = 0 : i64, tpu.core_type = #tpu.core_type<tc>, window_params = [{transform_indices = @transform_0, window_bounds = array<i64: 1, 1, 128>}, {transform_indices = @transform_1, window_bounds = array<i64: 1, 8, 128>}, {pipeline_mode = #tpu.pipeline_mode<synchronous>, transform_indices = @transform_2, window_bounds = array<i64: 256, 256>}, {transform_indices = @transform_3, window_bounds = array<i64: 1, 1, 256>}, {pipeline_mode = #tpu.pipeline_mode<synchronous>, transform_indices = @transform_4, window_bounds = array<i64: 256, 64>}, {pipeline_mode = #tpu.pipeline_mode<synchronous>, transform_indices = @transform_5, window_bounds = array<i64: 1, 64>}, {transform_indices = @transform_6, window_bounds = array<i64: 1, 8, 64>}]} {
    %c0 = arith.constant 0 : index
    %c0_0 = arith.constant 0 : index
    %c0_1 = arith.constant 0 : index
    %0 = vector.load %arg2[%c0, %c0_0, %c0_1] : memref<1x1x128xbf16, #tpu.memory_space<vmem>>, vector<1x1x128xbf16>
    %1 = vector.shape_cast %0 : vector<1x1x128xbf16> to vector<1x128xbf16>
    %c0_2 = arith.constant 0 : index
    %c0_3 = arith.constant 0 : index
    %c0_4 = arith.constant 0 : index
    %2 = vector.load %arg3[%c0_2, %c0_3, %c0_4] : memref<1x8x128xbf16, #tpu.memory_space<vmem>>, vector<1x8x128xbf16>
    %3 = vector.shape_cast %2 : vector<1x8x128xbf16> to vector<8x128xbf16>
    %4 = vector.broadcast %1 : vector<1x128xbf16> to vector<8x128xbf16>
    %5 = arith.mulf %4, %3 : vector<8x128xbf16>
    %6 = tpu.concatenate %5, %3 in 1 : vector<8x128xbf16>, vector<8x128xbf16> -> vector<8x256xbf16>
    %c0_5 = arith.constant 0 : index
    %c0_6 = arith.constant 0 : index
    %7 = vector.load %arg4[%c0_5, %c0_6] : memref<256x256xbf16, #tpu.memory_space<vmem>>, vector<256x256xbf16>
    %cst = arith.constant dense<0.000000e+00> : vector<8x256xf32>
    %8 = tpu.matmul %6, %7, %cst {dimension_numbers = #tpu.dot_dimension_numbers<[1], [0], [0], [1], [0, 0, 1, 1], [], []>} : vector<8x256xbf16>, vector<256x256xbf16>, vector<8x256xf32> -> vector<8x256xf32>
    %c0_7 = arith.constant 0 : index
    %c0_8 = arith.constant 0 : index
    %c0_9 = arith.constant 0 : index
    %9 = vector.load %arg5[%c0_7, %c0_8, %c0_9] : memref<1x1x256xf32, #tpu.memory_space<vmem>>, vector<1x1x256xf32>
    %10 = vector.shape_cast %9 : vector<1x1x256xf32> to vector<1x256xf32>
    %11 = vector.broadcast %10 : vector<1x256xf32> to vector<8x256xf32>
    %12 = arith.addf %8, %11 : vector<8x256xf32>
    %cst_10 = arith.constant 0.000000e+00 : f32
    %13 = vector.broadcast %cst_10 : f32 to vector<8x256xf32>
    %14 = arith.maximumf %12, %13 : vector<8x256xf32>
    %15 = arith.truncf %14 : vector<8x256xf32> to vector<8x256xbf16>
    %c0_11 = arith.constant 0 : index
    %c0_12 = arith.constant 0 : index
    %16 = vector.load %arg6[%c0_11, %c0_12] : memref<256x64xbf16, #tpu.memory_space<vmem>>, vector<256x64xbf16>
    %cst_13 = arith.constant dense<0.000000e+00> : vector<8x64xf32>
    %17 = tpu.matmul %15, %16, %cst_13 {dimension_numbers = #tpu.dot_dimension_numbers<[1], [0], [0], [1], [0, 0, 1, 1], [], []>} : vector<8x256xbf16>, vector<256x64xbf16>, vector<8x64xf32> -> vector<8x64xf32>
    %c0_14 = arith.constant 0 : index
    %c0_15 = arith.constant 0 : index
    %18 = vector.load %arg7[%c0_14, %c0_15] : memref<1x64xf32, #tpu.memory_space<vmem>>, vector<1x64xf32>
    %19 = vector.broadcast %18 : vector<1x64xf32> to vector<8x64xf32>
    %20 = arith.addf %17, %19 : vector<8x64xf32>
    %c0_16 = arith.constant 0 : index
    %c0_17 = arith.constant 0 : index
    %c0_18 = arith.constant 0 : index
    %21 = vector.load %arg8[%c0_16, %c0_17, %c0_18] : memref<1x8x64xf32, #tpu.memory_space<vmem>>, vector<1x8x64xf32>
    %22 = vector.shape_cast %21 : vector<1x8x64xf32> to vector<8x64xf32>
    %23 = vector.shape_cast %20 : vector<8x64xf32> to vector<1x8x64xf32>
    tpu.vector_store %arg8[%c0_16, %c0_17, %c0_18], %23 {strides = array<i32>} : memref<1x8x64xf32, #tpu.memory_space<vmem>>, vector<1x8x64xf32>,
    return
  }
  func.func @transform_0(%arg0: i32, %arg1: i32) -> (i32, i32, i32) {
    %c0_i32 = arith.constant 0 : i32
    %c0_i32_0 = arith.constant 0 : i32
    %c0_i32_1 = arith.constant 0 : i32
    return %arg0, %c0_i32, %c0_i32_0 : i32, i32, i32
  }
  func.func @transform_1(%arg0: i32, %arg1: i32) -> (i32, i32, i32) {
    %c0_i32 = arith.constant 0 : i32
    %c0_i32_0 = arith.constant 0 : i32
    return %arg0, %arg1, %c0_i32 : i32, i32, i32
  }
  func.func @transform_2(%arg0: i32, %arg1: i32) -> (i32, i32) {
    %c0_i32 = arith.constant 0 : i32
    %c0_i32_0 = arith.constant 0 : i32
    %c0_i32_1 = arith.constant 0 : i32
    return %c0_i32, %c0_i32_0 : i32, i32
  }
  func.func @transform_3(%arg0: i32, %arg1: i32) -> (i32, i32, i32) {
    %c0_i32 = arith.constant 0 : i32
    %c0_i32_0 = arith.constant 0 : i32
    %c0_i32_1 = arith.constant 0 : i32
    return %arg0, %c0_i32, %c0_i32_0 : i32, i32, i32
  }
  func.func @transform_4(%arg0: i32, %arg1: i32) -> (i32, i32) {
    %c0_i32 = arith.constant 0 : i32
    %c0_i32_0 = arith.constant 0 : i32
    %c0_i32_1 = arith.constant 0 : i32
    return %c0_i32, %c0_i32_0 : i32, i32
  }
  func.func @transform_5(%arg0: i32, %arg1: i32) -> (i32, i32) {
    %c0_i32 = arith.constant 0 : i32
    %c0_i32_0 = arith.constant 0 : i32
    %c0_i32_1 = arith.constant 0 : i32
    return %c0_i32, %c0_i32_0 : i32, i32
  }
  func.func @transform_6(%arg0: i32, %arg1: i32) -> (i32, i32, i32) {
    %c0_i32 = arith.constant 0 : i32
    %c0_i32_0 = arith.constant 0 : i32
    return %arg0, %arg1, %c0_i32 : i32, i32, i32
  }
}

</mosaic_0001>

<bundles_post_ra>
// kernel: simple_neumf.1
= control target key start
LH: loop header
LB: loop body
LE: loop exit
PB: predicated region body
PF: predicated region fallthrough
CT: control target
= control target key end

     0   :  { %s1069_s21 = smov 0   ;;  %s1071_s22 = smov 0   ;;  %s1265_s0 = inlined_call_operand.vmem [shape: bf16[2,1,128], index: 0, kind: input, shape index: {}]   ;;  %s1266_s1 = inlined_call_operand.vmem [shape: bf16[2,8,128], index: 1, kind: input, shape index: {}]   ;;  %s1267_s2 = inlined_call_operand.vmem [shape: bf16[256,256], index: 2, kind: input, shape index: {}]   ;;  %s1268_s3 = inlined_call_operand.vmem [shape: f32[2,1,256], index: 3, kind: input, shape index: {}]   ;;  %s1269_s4 = inlined_call_operand.vmem [shape: bf16[256,64], index: 4, kind: input, shape index: {}]   ;;  %s1270_s5 = inlined_call_operand.vmem [shape: f32[1,64], index: 5, kind: input, shape index: {}]   ;;  %s1271_s6 = inlined_call_operand.vmem [shape: f32[2,8,64], index: 6, kind: output, shape index: {}]  }
   0x1   :  { %s1073_s23 = smov 0  }
   0x2 LB: > { %s28_s24 = sadd.s32 1, %s1028_s22  ;;  %p845_p0 = scmp.ge.s32.totalorder %s1032_s23, 1  ;;  %s1032_s23 = sphi %s1073_s23, %s16_s23   ;;  %s1028_s22 = sphi %s1071_s22, %s1273_s22   ;;  %s1024_s21 = sphi %s1069_s21, %s1272_s21  }
   0x3   : > { %p30_p1 = scmp.ge.s32.totalorder %s28_s24, 2  ;;  %p247_p2 = scmp.lt.s32.totalorder %s1032_s23, 3 }
   0x5   : > { %s1275_s24 = smov (%p30_p1, %s28_s24), 0  ;;  %p248_p3 = pnand %p845_p0, %p247_p2 }
   0x6   : > { %v946_v0 = vld [vmem:[%s1267_s2 + $0x4] ss:$8 sps:$4 sm:$0xff] (!%p248_p3)   ;;  %v948_v1 = vld [vmem:[%s1267_s2] ss:$8 sps:$4 sm:$0xff] (!%p248_p3)   ;;  %v949_v2 = vld [vmem:[%s1267_s2 + $0x14] ss:$8 sps:$4 sm:$0xff] (!%p248_p3)   ;;  %v315_v38 = vlaneseq (!%p248_p3) }
   0x7   : > { %251 = sbr.rel (%p248_p3) target bundleno = 509 (0x1fd), region = 44  ;;  %524 = vmatprep.subr.bf16.mxu0 (!%p248_p3), %v946_v0  ;;  %v951_v3 = vld [vmem:[%s1267_s2 + $0x10] ss:$8 sps:$4 sm:$0xff] (!%p248_p3)   ;;  %v952_v4 = vld [vmem:[%s1267_s2 + $0x24] ss:$8 sps:$4 sm:$0xff] (!%p248_p3)   ;;  %p288_p4 = scmp.lt.s32.totalorder (!%p248_p3), %s1024_s21, 1 }
   0x8   : > { %525 = vmatpush1.bf16.msra.mxu0 (!%p248_p3), %v948_v1  ;;  %v954_v5 = vld [vmem:[%s1267_s2 + $0x20] ss:$8 sps:$4 sm:$0xff] (!%p248_p3)   ;;  %v955_v6 = vld [vmem:[%s1267_s2 + $0x34] ss:$8 sps:$4 sm:$0xff] (!%p248_p3)   ;;  %v957_v7 = vld [vmem:[%s1267_s2 + $0x30] ss:$8 sps:$4 sm:$0xff] (!%p248_p3)  }
   0x9   : > { %526 = vmatprep.subr.bf16.mxu0 (!%p248_p3), %v949_v2  ;;  %v958_v8 = vld [vmem:[%s1267_s2 + $0x44] ss:$8 sps:$4 sm:$0xff] (!%p248_p3)   ;;  %v960_v9 = vld [vmem:[%s1267_s2 + $0x40] ss:$8 sps:$4 sm:$0xff] (!%p248_p3)   ;;  %v961_v10 = vld [vmem:[%s1267_s2 + $0x54] ss:$8 sps:$4 sm:$0xff] (!%p248_p3)  }
   0xa   : > { %v963_v11 = vld [vmem:[%s1267_s2 + $0x50] ss:$8 sps:$4 sm:$0xff] (!%p248_p3)   ;;  %v964_v12 = vld [vmem:[%s1267_s2 + $0x64] ss:$8 sps:$4 sm:$0xff] (!%p248_p3)   ;;  %v966_v13 = vld [vmem:[%s1267_s2 + $0x60] ss:$8 sps:$4 sm:$0xff] (!%p248_p3)  }
   0xb   : > { %v967_v15 = vld [vmem:[%s1267_s2 + $0x74] ss:$8 sps:$4 sm:$0xff] (!%p248_p3)   ;;  %v994_v16 = vld [vmem:[%s1269_s4 + $0x40] sm:$0xff] (!%p248_p3)   ;;  %v996_v18 = vld [vmem:[%s1269_s4 + $0x48] sm:$0xff] (!%p248_p3)   ;;  %v316_v41 = vshrl.u32 (!%p248_p3), %v315_v38, 7  ;;  %vm744_vm0 = vcmask (!%p248_p3), 523264  }
   0xc   : > { %527 = vmatpush1.bf16.msra.mxu0 (!%p248_p3), %v951_v3  ;;  %v995_v17 = vld [vmem:[%s1269_s4] sm:$0xff] (!%p248_p3)   ;;  %900 = vmatprep.subr.bf16.mxu1 (!%p248_p3), %v994_v16  ;;  %v997_v19 = vld [vmem:[%s1269_s4 + $0x8] sm:$0xff] (!%p248_p3)   ;;  %v998_v20 = vld [vmem:[%s1269_s4 + $0x50] sm:$0xff] (!%p248_p3)  }
   0xd   : > { %528 = vmatprep.subr.bf16.mxu0 (!%p248_p3), %v952_v4  ;;  %901 = vmatpush3.bf16.msra.mxu1 (!%p248_p3), %v995_v17  ;;  %v969_v21 = vld [vmem:[%s1267_s2 + $0x70] ss:$8 sps:$4 sm:$0xff] (!%p248_p3)   ;;  %v970_v22 = vld [vmem:[%s1267_s2 + $0x84] ss:$8 sps:$4 sm:$0xff] (!%p248_p3)   ;;  %v972_v25 = vld [vmem:[%s1267_s2 + $0x80] ss:$8 sps:$4 sm:$0xff] (!%p248_p3)  }
   0xe   : > { %s1277_s21 = smov (!%p288_p4, %s1024_s21), 1  ;;  %902 = vmatprep.subr.bf16.mxu1 %v996_v18  ;;  %v999_v23 = vld [vmem:[%s1269_s4 + $0x10] sm:$0xff]   ;;  %v1000_v24 = vld [vmem:[%s1269_s4 + $0x58] sm:$0xff]   ;;  %v976_v29 = vld [vmem:[%s1267_s2 + $0xa4] ss:$8 sps:$4 sm:$0xff]   ;;  %v317_v46 = vsub.s32 0, %v316_v41 }
   0xf   : > { %s846_s25 = sshll.u32 %s1277_s21, 2  ;;  %v973_v26 = vld [vmem:[%s1267_s2 + $0x94] ss:$8 sps:$4 sm:$0xff]   ;;  %v975_v27 = vld [vmem:[%s1267_s2 + $0x90] ss:$8 sps:$4 sm:$0xff]   ;;  %v1002_v30 = vld [vmem:[%s1269_s4 + $0x60] sm:$0xff]   ;;  %s290_s29 = scalar_lea.vmem %s1265_s0, %s1277_s21 }
  0x10   : > { %529 = vmatpush1.bf16.msra.mxu0 %v954_v5  ;;  %s297_s30 = scalar_lea.vmem %s1266_s1, %s846_s25  ;;  %v1001_v28 = vld [vmem:[%s1269_s4 + $0x18] sm:$0xff]   ;;  %v1003_v31 = vld [vmem:[%s1269_s4 + $0x20] sm:$0xff]   ;;  %v1004_v32 = vld [vmem:[%s1269_s4 + $0x68] sm:$0xff]   ;;  %s847_s28 = sshll.u32 %s1277_s21, 1  ;;  %v360_v57 = vsub.s32 1, %v316_v41 }
  0x11   : > { %530 = vmatprep.subr.bf16.mxu0 %v955_v6  ;;  %v1135_v14 = vld [vmem:[%s297_s30] sm:$0xf]  ;;  %903 = vmatpush3.bf16.msra.mxu1 %v997_v19  ;;  %v979_v34 = vld [vmem:[%s1267_s2 + $0xb4] ss:$8 sps:$4 sm:$0xff]   ;;  %v1005_v35 = vld [vmem:[%s1269_s4 + $0x28] sm:$0xff]   ;;  %s301_s7 = scalar_lea.vmem %s1268_s3, %s847_s28  ;;  %s848_s8 = sshll.u32 %s1277_s21, 3 }
  0x12   : > { %556 = vmatprep.mubr.bf16.mxu0 %v1135_v14  ;;  %904 = vmatprep.subr.bf16.mxu1 %v998_v20  ;;  %v978_v33 = vld [vmem:[%s1267_s2 + $0xa0] ss:$8 sps:$4 sm:$0xff]   ;;  %v981_v36 = vld [vmem:[%s1267_s2 + $0xb0] ss:$8 sps:$4 sm:$0xff]   ;;  %v982_v37 = vld [vmem:[%s1267_s2 + $0xc4] ss:$8 sps:$4 sm:$0xff]   ;;  %s308_s13 = scalar_lea.vmem %s1271_s6, %s848_s8 }
  0x13   : > { %v984_v39 = vld [vmem:[%s1267_s2 + $0xc0] ss:$8 sps:$4 sm:$0xff]   ;;  %v985_v40 = vld [vmem:[%s1267_s2 + $0xd4] ss:$8 sps:$4 sm:$0xff]   ;;  %v987_v42 = vld [vmem:[%s1267_s2 + $0xd0] ss:$8 sps:$4 sm:$0xff]  }
  0x14   : > { %531 = vmatpush1.bf16.msra.mxu0 %v957_v7  ;;  %v310_v43 = vld [vmem:[%s290_s29] sm:$0x1]  ;;  %v988_v44 = vld [vmem:[%s1267_s2 + $0xe4] ss:$8 sps:$4 sm:$0xff]   ;;  %v991_v48 = vld [vmem:[%s1267_s2 + $0xf4] ss:$8 sps:$4 sm:$0xff]  }
  0x15   : > { %532 = vmatprep.subr.bf16.mxu0 %v958_v8  ;;  %905 = vmatpush3.bf16.msra.mxu1 %v999_v23  ;;  %v313_v45 = vpack.i.b16 %v310_v43, %v310_v43  ;;  %v990_v47 = vld [vmem:[%s1267_s2 + $0xe0] ss:$8 sps:$4 sm:$0xff]   ;;  %v993_v50 = vld [vmem:[%s1267_s2 + $0xf0] ss:$8 sps:$4 sm:$0xff]  }
  0x16   : > { %906 = vmatprep.subr.bf16.mxu1 %v1000_v24  ;;  %v1006_v52 = vld [vmem:[%s1269_s4 + $0x70] sm:$0xff]   ;;  %v1008_v54 = vld [vmem:[%s1269_s4 + $0x78] sm:$0xff]   ;;  %v352_v56 = vld [vmem:[%s301_s7] sm:$0x3] }
  0x17   : > { %v318_v49 = vrot.slane %v313_v45, %v317_v46  ;;  %v1007_v53 = vld [vmem:[%s1269_s4 + $0x30] sm:$0xff]   ;;  %v1009_v55 = vld [vmem:[%s1269_s4 + $0x38] sm:$0xff]   ;;  %v357_v58 = vrot.slane %v352_v56, %v317_v46  ;;  %v361_v59 = vrot.slane %v352_v56, %v360_v57  ;;  %v881_v7 = vld [vmem:[%s1270_s5] ss:$0 sm:$0xff] }
  0x18   : > { %533 = vmatpush1.bf16.msra.mxu0 %v960_v9 }
  0x19   : > { %534 = vmatprep.subr.bf16.mxu0 %v961_v10  ;;  %907 = vmatpush3.bf16.msra.mxu1 %v1001_v28  ;;  %v319_v51 = vmul.bf16 %v318_v49, %v1135_v14 }
  0x1a   : > { %908 = vmatprep.subr.bf16.mxu1 %v1002_v30 }
  0x1c   : > { %535 = vmatpush1.bf16.msra.mxu0 %v963_v11 }
  0x1d   : > { %536 = vmatprep.subr.bf16.mxu0 %v964_v12  ;;  %909 = vmatpush3.bf16.msra.mxu1 %v1003_v31 }
  0x1e   : > { %910 = vmatprep.subr.bf16.mxu1 %v1004_v32 }
  0x20   : > { %537 = vmatpush1.bf16.msra.mxu0 %v966_v13 }
  0x21   : > { %538 = vmatprep.subr.bf16.mxu0 %v967_v15  ;;  %911 = vmatpush3.bf16.msra.mxu1 %v1005_v35 }
  0x22   : > { %912 = vmatprep.subr.bf16.mxu1 %v1006_v52 }
  0x24   : > { %539 = vmatpush1.bf16.msra.mxu0 %v969_v21 }
  0x25   : > { %540 = vmatprep.subr.bf16.mxu0 %v970_v22  ;;  %913 = vmatpush3.bf16.msra.mxu1 %v1007_v53 }
  0x26   : > { %914 = vmatprep.subr.bf16.mxu1 %v1008_v54 }
  0x28   : > { %541 = vmatpush1.bf16.msra.mxu0 %v972_v25 }
  0x29   : > { %542 = vmatprep.subr.bf16.mxu0 %v973_v26  ;;  %915 = vmatpush3.bf16.msra.mxu1 %v1009_v55 }
  0x2c   : > { %543 = vmatpush1.bf16.msra.mxu0 %v975_v27 }
  0x2d   : > { %544 = vmatprep.subr.bf16.mxu0 %v976_v29 }
  0x30   : > { %545 = vmatpush1.bf16.msra.mxu0 %v978_v33 }
  0x31   : > { %546 = vmatprep.subr.bf16.mxu0 %v979_v34 }
  0x34   : > { %547 = vmatpush1.bf16.msra.mxu0 %v981_v36 }
  0x35   : > { %548 = vmatprep.subr.bf16.mxu0 %v982_v37 }
  0x38   : > { %549 = vmatpush1.bf16.msra.mxu0 %v984_v39 }
  0x39   : > { %550 = vmatprep.subr.bf16.mxu0 %v985_v40 }
  0x3c   : > { %551 = vmatpush1.bf16.msra.mxu0 %v987_v42 }
  0x3d   : > { %552 = vmatprep.subr.bf16.mxu0 %v988_v44 }
  0x40   : > { %553 = vmatpush1.bf16.msra.mxu0 %v990_v47 }
  0x41   : > { %554 = vmatprep.subr.bf16.mxu0 %v991_v48 }
  0x44   : > { %555 = vmatpush1.bf16.msra.mxu0 %v993_v50 }
  0x47   : > { %557 = vmatmul.mubr.bf16.vlgmr.msra.gmra.mrb[0].mxu0 %v319_v51 }
 0x11a   : > { %v558_v60 = vpop.f32.mrb[0].mxu0 }
 0x11b   : > { %v559_v61 = vadd.f32 %v558_v60, %v357_v58  ;;  %v560_v62 = vpop.f32.mrb[1].mxu0 }
 0x11c   : > { %v561_v63 = vadd.f32 %v560_v62, %v361_v59  ;;  %v562_v0 = vpop.f32.mrb[2].mxu0 }
 0x11d   : > { %v565_v1 = vmax.f32 %v559_v61, 0.0  ;;  %v563_v2 = vpop.f32.mrb[3].mxu0 }
 0x11e   : > { %v566_v3 = vmax.f32 %v561_v63, 0.0 }
 0x11f   : > { %v567_v5 = vpack.c.bf16 %v565_v1, %v565_v1 }
 0x120   : > { %v568_v4 = vpack.c.bf16 %v566_v3, %v566_v3 }
 0x122   : > { %736 = vmatprep.mubr.bf16.mxu1 %v568_v4 }
 0x123   : > { %737 = vmatmul.mubr.bf16.vlgmr.msra.gmra.mrb[0].mxu1 %v567_v5 }
 0x1f6   : > { %v916_v6 = vpop.f32.mrb[0].mxu1 }
 0x1f7   : > { %v917_v8 = vpop.f32.mrb[1].mxu1 }
 0x1f8   : > { %v918_v9 = vadd.f32 %v917_v8, %v916_v6  ;;  %v919_v10 = vpop.f32.mrb[2].mxu1 }
 0x1f9   : > { %v920_v11 = vpop.f32.mrb[3].mxu1 }
 0x1fa   : > { %v739_v12 = vadd.f32 %v918_v9, %v881_v7 }
 0x1fc   : > { %745 = vst.msk [vmem:[%s308_s13] sm:$0xff] %vm744_vm0, %v739_v12 }
 0x1fd PF: > { %s16_s23 = sadd.s32 1, %s1032_s23   ;;  %s1272_s21 = smov %s1028_s22 }
 0x1fe   : > { %p13_p5 = scmp.ge.s32.totalorder %s16_s23, 4   ;;  %s1273_s22 = smov %s1275_s24 }
 0x200   :  { %15 = sbr.rel (!%p13_p5) target bundleno = 2 (0x2), region = 80 }

</bundles_post_ra>
